<compile_context>
chip_gen: v7x
topology: tpu7x:2x2x1
jax: 0.10.0
libtpu: 0.0.40
codegen_flags: <defaults>
</compile_context>

<pallas_src>
import jax
import jax.numpy as jnp
import numpy as np
from jax.experimental import pallas as pl
from jax.experimental.pallas import tpu as pltpu


_SMALL_BYPASS_ELEMS = 1 << 15   # below this, plain XLA beats pallas_call overhead
_TARGET_TILE_BYTES = 2 << 20    # ~2 MiB per *input* tile (output tile is 2x)
_VMEM_LIMIT_BYTES = 32 << 20    # explicit scoped-VMEM limit; safe on v5e/v6e/v7x


def _merge_kernel(x_ref, y_ref, o_ref):
    """Interleave x and y along the lane axis.

    x_ref, y_ref: (TB, TC) VMEM tiles.
    o_ref:        (TB, 2*TC) VMEM tile with o[:, 2c] = x[:, c], o[:, 2c+1] = y[:, c].
    """
    x = x_ref[...]
    y = y_ref[...]
    tb, c = x.shape
    # Pair x/y along a new trailing axis and collapse it into the lane axis:
    # (TB, TC, 2) -> (TB, 2*TC).  The lane shuffle happens once in VMEM; the HBM
    # store is a dense, full-lane slab.
    o_ref[...] = jnp.stack([x, y], axis=-1).reshape(tb, 2 * c)


def _choose_blocks(batch, channels, itemsize):
    """Pick (block_rows, block_channels) targeting ~2 MiB per input tile."""
    itemsize = int(itemsize)
    # Sublane packing of the dtype: f32 -> 8 rows/vreg, bf16 -> 16, int8/fp8 -> 32.
    sub = max(8, 32 // max(1, itemsize))

    # Channel block: keep full C when a full-C row-group of `sub` rows still fits
    # the tile budget; otherwise tile channels in multiples of 128 lanes.
    if channels <= 128 or channels * itemsize * sub <= _TARGET_TILE_BYTES:
        block_c = channels
    else:
        block_c = (_TARGET_TILE_BYTES // (sub * itemsize)) // 128 * 128
        block_c = int(max(128, min(block_c, (channels // 128) * 128)))

    rows = _TARGET_TILE_BYTES // max(1, block_c * itemsize)
    if rows >= batch:
        block_rows = batch                      # full dim: always layout-legal
    else:
        block_rows = int(max(sub, (rows // sub) * sub))
        block_rows = min(block_rows, batch)
    return block_rows, block_c


def merger_2(x, y, dim=2, *, block_rows=None, block_channels=None, force_pallas=False):
    """JAX/Pallas equivalent of Merger_2.forward.

    x, y: arrays whose leading two dims are (B, C) and whose total size is B*C
          (mirrors PyTorch's x.view(B, C, 1)); e.g. (B, C) or (B, C, 1).
    Returns (B, C, 2) with out[..., 0] = x and out[..., 1] = y.
    """
    if dim != 2:
        raise NotImplementedError("Merger_2 kernel implemented for dim=2 (the module default)")

    batch, channels = int(x.shape[0]), int(x.shape[1])
    if x.size != batch * channels or y.size != batch * channels:
        raise ValueError("inputs must have exactly batch*channels elements (like torch .view)")
    if x.dtype != y.dtype:
        raise TypeError("x and y must share a dtype")

    x2 = x.reshape(batch, channels)
    y2 = y.reshape(batch, channels)

    # Small-shape bypass: launch + per-step overhead dominates, and 2C < 128
    # lanes would force masked stores anyway.  Plain XLA fuses with neighbors.
    if not force_pallas and batch * channels <= _SMALL_BYPASS_ELEMS:
        return jnp.stack([x2, y2], axis=-1)

    itemsize = int(x2.dtype.itemsize)
    auto_rows, auto_c = _choose_blocks(batch, channels, itemsize)
    br = auto_rows if block_rows is None else min(int(block_rows), batch)
    bc = auto_c if block_channels is None else min(int(block_channels), channels)

    grid = (pl.cdiv(batch, br), pl.cdiv(channels, bc))

    # Pure streaming kernel: 0 flops, 4*B*C*itemsize bytes (read x, read y, write 2x).
    cost = pl.CostEstimate(
        flops=0,
        transcendentals=0,
        bytes_accessed=4 * batch * channels * itemsize,
    )

    out_flat = pl.pallas_call(
        _merge_kernel,
        out_shape=jax.ShapeDtypeStruct((batch, 2 * channels), x2.dtype),
        grid=grid,
        in_specs=[
            pl.BlockSpec((br, bc), lambda i, j: (i, j)),
            pl.BlockSpec((br, bc), lambda i, j: (i, j)),
        ],
        out_specs=pl.BlockSpec((br, 2 * bc), lambda i, j: (i, j)),
        compiler_params=pltpu.CompilerParams(
            dimension_semantics=("parallel", "parallel"),
            vmem_limit_bytes=_VMEM_LIMIT_BYTES,
        ),
        cost_estimate=cost,
    )(x2, y2)

    # Free, contiguous reshape: the interleaved (B, 2C) slab is bit-identical in
    # HBM to torch.cat((x.view(B,C,1), y.view(B,C,1)), dim=2).
    return out_flat.reshape(batch, channels, 2)


def _reference(x2, y2):
    return jnp.concatenate([x2[..., None], y2[..., None]], axis=2)


if __name__ == "__main__":
    key = jax.random.PRNGKey(0)
    k1, k2, k3, k4, k5, k6, k7, k8 = jax.random.split(key, 8)

    # Case 1: small module-spec shape, forced through the Pallas kernel.
    B, C = 2, 32
    x = jax.random.normal(k1, (B, C), dtype=jnp.float32)
    y = jax.random.normal(k2, (B, C), dtype=jnp.float32)
    out = jax.block_until_ready(merger_2(x, y, dim=2, force_pallas=True))
    assert out.shape == (B, C, 2), out.shape
    np.testing.assert_array_equal(np.asarray(out), np.asarray(_reference(x, y)))

    # Case 2: same small shape through the default path (small-shape bypass).
    out_b = jax.block_until_ready(merger_2(x.reshape(B, C, 1), y, dim=2))
    np.testing.assert_array_equal(np.asarray(out_b), np.asarray(_reference(x, y)))

    # Case 3: tiled / pipelined path with both grid axes active (above bypass).
    B3, C3 = 128, 384
    x3 = jax.random.normal(k3, (B3, C3), dtype=jnp.float32)
    y3 = jax.random.normal(k4, (B3, C3), dtype=jnp.float32)
    out3 = jax.block_until_ready(merger_2(x3, y3, dim=2, block_rows=16, block_channels=128))
    assert out3.shape == (B3, C3, 2), out3.shape
    np.testing.assert_array_equal(np.asarray(out3), np.asarray(_reference(x3, y3)))

    # Case 4: ragged batch and channel tiles (masked edges on both grid axes).
    B4, C4 = 100, 200
    x4 = jax.random.normal(k5, (B4, C4), dtype=jnp.float32)
    y4 = jax.random.normal(k6, (B4, C4), dtype=jnp.float32)
    out4 = jax.block_until_ready(
        merger_2(x4, y4, dim=2, block_rows=16, block_channels=128, force_pallas=True))
    np.testing.assert_array_equal(np.asarray(out4), np.asarray(_reference(x4, y4)))

    # Case 5: bf16 (sublane-packed dtype) through the kernel.
    B5, C5 = 64, 256
    x5 = jax.random.normal(k7, (B5, C5), dtype=jnp.bfloat16)
    y5 = jax.random.normal(k8, (B5, C5), dtype=jnp.bfloat16)
    out5 = jax.block_until_ready(merger_2(x5, y5, dim=2, force_pallas=True))
    np.testing.assert_array_equal(np.asarray(out5), np.asarray(_reference(x5, y5)))

    print("KERNEL_OK")
</pallas_src>

<mosaic_0001>
module attributes {stable_mosaic.version = 11 : i64} {
  func.func @_merge_kernel(%arg0: i32, %arg1: i32, %arg2: memref<2x32xf32, #tpu.memory_space<vmem>>, %arg3: memref<2x32xf32, #tpu.memory_space<vmem>>, %arg4: memref<2x64xf32, #tpu.memory_space<vmem>>) attributes {dimension_semantics = [#tpu.dimension_semantics<parallel>, #tpu.dimension_semantics<parallel>], iteration_bounds = array<i64: 1, 1>, scalar_prefetch = 0 : i64, scratch_operands = 0 : i64, tpu.core_type = #tpu.core_type<tc>, window_params = [{transform_indices = @transform_0, window_bounds = array<i64: 2, 32>}, {transform_indices = @transform_1, window_bounds = array<i64: 2, 32>}, {transform_indices = @transform_2, window_bounds = array<i64: 2, 64>}]} {
    %c0 = arith.constant 0 : index
    %c0_0 = arith.constant 0 : index
    %0 = vector.load %arg2[%c0, %c0_0] : memref<2x32xf32, #tpu.memory_space<vmem>>, vector<2x32xf32>
    %c0_1 = arith.constant 0 : index
    %c0_2 = arith.constant 0 : index
    %1 = vector.load %arg3[%c0_1, %c0_2] : memref<2x32xf32, #tpu.memory_space<vmem>>, vector<2x32xf32>
    %2 = vector.shape_cast %0 : vector<2x32xf32> to vector<2x32x1xf32>
    %3 = vector.shape_cast %1 : vector<2x32xf32> to vector<2x32x1xf32>
    %4 = tpu.concatenate %2, %3 in 2 : vector<2x32x1xf32>, vector<2x32x1xf32> -> vector<2x32x2xf32>
    %5 = vector.shape_cast %4 : vector<2x32x2xf32> to vector<2x64xf32>
    %c0_3 = arith.constant 0 : index
    %c0_4 = arith.constant 0 : index
    %6 = vector.load %arg4[%c0_3, %c0_4] : memref<2x64xf32, #tpu.memory_space<vmem>>, vector<2x64xf32>
    tpu.vector_store %arg4[%c0_3, %c0_4], %5 {strides = array<i32>} : memref<2x64xf32, #tpu.memory_space<vmem>>, vector<2x64xf32>,
    return
  }
  func.func @transform_0(%arg0: i32, %arg1: i32) -> (i32, i32) {
    %c0_i32 = arith.constant 0 : i32
    return %arg0, %arg1 : i32, i32
  }
  func.func @transform_1(%arg0: i32, %arg1: i32) -> (i32, i32) {
    %c0_i32 = arith.constant 0 : i32
    return %arg0, %arg1 : i32, i32
  }
  func.func @transform_2(%arg0: i32, %arg1: i32) -> (i32, i32) {
    %c0_i32 = arith.constant 0 : i32
    return %arg0, %arg1 : i32, i32
  }
}

</mosaic_0001>

<bundles_post_ra>
// kernel: tpu_custom_call.1
= control target key start
LH: loop header
LB: loop body
LE: loop exit
PB: predicated region body
PF: predicated region fallthrough
CT: control target
= control target key end

     0   :  { %7 = vsyncpa [#allocation3], 0  ;;  %s824_s0 = inlined_call_operand.hbm [shape: f32[2,32], index: 0, kind: input, shape index: {}]   ;;  %s825_s1 = inlined_call_operand.vmem [shape: f32[2,32], index: 1, kind: input, shape index: {}]   ;;  %s826_s2 = inlined_call_operand.hbm [shape: f32[2,64], index: 2, kind: output, shape index: {}]  }
   0x1   :  { %8 = vsyncpa [#allocation4], 0  ;;  %s662_s9 = smov [#allocation2]   ;;  %s614_s13 = scalar_lea.hbm %s824_s0, 32 }
   0x2   :  { %s15_s10 = sshll.u32 %s662_s9, 4  ;;  %p615_p0 = scmp.ne.s32.totalorder %s824_s0, %s614_s13  ;;  %s16_s10 = int_to_ptr.vmem [resolvable:$true] %s15_s10 }
   0x3   :  { %p618_p1 = scmp.lt.u32.totalorder %s614_s13, %s824_s0 }
   0x5   :  { %p620_p2 = pnand %p618_p1, %p615_p0 }
   0x7   :  { %623 = shalt.err (!%p620_p2)
}
   0x8   :  { %s624_s18 = scalar_lea.vmem %s16_s10, 32  ;;  %p629_p4 = scmp.lt.s32.totalorder %s16_s10, %s16_s10 }
   0x9   :  { %p625_p3 = scmp.ne.s32.totalorder %s16_s10, %s624_s18  ;;  %p630_p5 = scmp.lt.s32.totalorder %s624_s18, %s624_s18 }
   0xb   :  { %p631_p6 = por %p630_p5, %p629_p4 }
   0xd   :  { %p632_p7 = pnand %p631_p6, %p625_p3 }
   0xf   :  { %635 = shalt.err (!%p632_p7)
}
  0x10   :  { %18 = dma.hbm_to_vmem [thread:$0]  %s824_s0, 32, %s16_s10, [#allocation3]  }
  0x11   :  { %658 = dma.done.wait [#allocation3], 32  }
  0x12   :  { %659 = vsyncadd [#allocation3], 4294967264  ;;  %v26_v0 = vlaneseq  ;;  %v25_v4 = vld [vmem:[%s825_s1] sm:$0x3]  ;;  %v663_v10 = vmov 1983009808  }
  0x13   :  { %v24_v5 = vld [vmem:[#allocation2] sm:$0x3]  ;;  %v113_v11 = vunpack.c.l.s4 %v663_v10  ;;  %v664_v13 = vmov 1934713408   ;;  %vm102_vm0 = vcmask 7168   ;;  %s665_s0 = smov 4  }
  0x14   :  { %v27_v1 = vshrl.u32 %v26_v0, 7  ;;  %v144_v14 = vunpack.c.l.s4 %v664_v13  ;;  %v666_v34 = vmov 0.0   ;;  %s667_s1 = smov 2   ;;  %s668_s23 = smov 6   ;;  %vm499_vm1 = vcmask 15360  }
  0x15   :  { %v114_v12 = vunpack.c.0.s8 %v113_v11  ;;  %s669_s24 = smov 16   ;;  %s670_s25 = smov 18   ;;  %vm501_vm2 = vcmask 31744   ;;  %vm503_vm3 = vcmask 48128   ;;  %vm505_vm4 = vcmask 64512  }
  0x16   :  { %v28_v2 = vsub.s32 0, %v27_v1  ;;  %v47_v3 = vsub.s32 1, %v27_v1  ;;  %v145_v18 = vunpack.c.0.s8 %v144_v14  ;;  %s671_s26 = smov 20   ;;  %s672_s27 = smov 22   ;;  %vm507_vm5 = vcmask 80896  }
  0x17   :  { %v728_v17 = vsub.s32 %v114_v12, %v27_v1  ;;  %s673_s28 = smov 32   ;;  %s674_s29 = smov 34   ;;  %vm509_vm6 = vcmask 97280   ;;  %vm511_vm7 = vcmask 113664   ;;  %vm513_vm8 = vcmask 130048  }
  0x18   :  { %v67_v6 = vrot.slane %v25_v4, %v28_v2  ;;  %v29_v7 = vrot.slane %v24_v5, %v28_v2  ;;  %v86_v8 = vrot.slane %v25_v4, %v47_v3  ;;  %v48_v9 = vrot.slane %v24_v5, %v47_v3  ;;  %s675_s30 = smov 36   ;;  %s676_s3 = smov 38  }
  0x19   :  { %v732_v23 = vsub.s32 %v145_v18, %v27_v1  ;;  %s677_s4 = smov 48   ;;  %s678_s5 = smov 50   ;;  %vm515_vm9 = vcmask 146432   ;;  %vm517_vm10 = vcmask 162816   ;;  %vm519_vm11 = vcmask 179200  }
  0x1a   :  { %69 = vbcast.lane.b32.xlu1 %v67_v6, 256  ;;  %31 = vbcast.lane.b32.xlu0 %v29_v7, 256  ;;  %s679_s6 = smov 52   ;;  %s680_s7 = smov 54   ;;  %vm521_vm12 = vcmask 195584   ;;  %vm523_vm13 = vcmask 211968  }
  0x1b   :  { %s681_s8 = smov 8   ;;  %s682_s9 = smov 10   ;;  %vm525_vm14 = vcmask 228352   ;;  %vm527_vm15 = vcmask 244736  }
  0x1c   :  { %s683_s10 = smov 12   ;;  %s684_s11 = smov 14  }
  0x1d   :  { %s685_s12 = smov 24   ;;  %s686_s13 = smov 26  }
  0x1e   :  { %88 = vbcast.lane.b32.xlu1 %v86_v8, 256  ;;  %50 = vbcast.lane.b32.xlu0 %v48_v9, 256  ;;  %s687_s14 = smov 28   ;;  %s688_s15 = smov 30  }
  0x1f   :  { %s689_s16 = smov 40   ;;  %s690_s17 = smov 42  }
  0x20   :  { %s691_s18 = smov 44   ;;  %s692_s19 = smov 46  }
  0x21   :  { %s693_s20 = smov 56   ;;  %s694_s21 = smov 58  }
  0x22   :  { %54 = vbcast.lane.b32.xlu1 %v48_v9, 264  ;;  %35 = vbcast.lane.b32.xlu0 %v29_v7, 264  ;;  %s695_s22 = smov 60  }
  0x26   :  { %92 = vbcast.lane.b32.xlu1 %v86_v8, 264  ;;  %73 = vbcast.lane.b32.xlu0 %v67_v6, 264 }
  0x2a   :  { %58 = vbcast.lane.b32.xlu1 %v48_v9, 272  ;;  %39 = vbcast.lane.b32.xlu0 %v29_v7, 272 }
  0x2e   :  { %96 = vbcast.lane.b32.xlu1 %v86_v8, 272  ;;  %77 = vbcast.lane.b32.xlu0 %v67_v6, 272 }
  0x32   :  { %62 = vbcast.lane.b32.xlu1 %v48_v9, 280  ;;  %43 = vbcast.lane.b32.xlu0 %v29_v7, 280 }
  0x36   :  { %100 = vbcast.lane.b32.xlu1 %v86_v8, 280  ;;  %81 = vbcast.lane.b32.xlu0 %v67_v6, 280 }
  0x8c   :  { %v70_v15 = vpop.permute.xlu1 %69  ;;  %v32_v16 = vpop.permute.xlu0 %31 }
  0x8d   :  { %v103_v19 = vsel %vm102_vm0, %v32_v16, %v70_v15 }
  0x8e   :  { %v118_v24 = vrot.slane %v103_v19, %v728_v17  ;;  %v111_v1 = vcombine.high %v103_v19, %v666_v34 }
  0x90   :  { %v89_v20 = vpop.permute.xlu1 %88  ;;  %v51_v21 = vpop.permute.xlu0 %50  ;;  %v125_v10 = vrot.slane %v111_v1, %v728_v17 }
  0x91   :  { %v107_v22 = vsel %vm102_vm0, %v51_v21, %v89_v20 }
  0x92   :  { %v133_v25 = vrot.slane %v107_v22, %v728_v17  ;;  %v126_v60 = vcombine.high %v107_v22, %v666_v34 }
  0x94   :  { %v141_v26 = vcombine.low %v118_v24, %v133_v25  ;;  %v142_v27 = vcombine.high %v118_v24, %v133_v25  ;;  %v55_v28 = vpop.permute.xlu1 %54  ;;  %v36_v29 = vpop.permute.xlu0 %35  ;;  %v140_v6 = vrot.slane %v126_v60, %v728_v17 }
  0x96   :  { %v156_v30 = vrot.slane %v142_v27, %v732_v23  ;;  %v738_v31 = vrot.slane %v141_v26, %v732_v23  ;;  %v157_v12 = vcombine.low %v125_v10, %v140_v6  ;;  %v158_v18 = vcombine.high %v125_v10, %v140_v6 }
  0x98   :  { %v93_v32 = vpop.permute.xlu1 %92  ;;  %380 = vrot.lane.b32.xlu1 %v156_v30, %s665_s0  ;;  %v74_v33 = vpop.permute.xlu0 %73  ;;  %v173_v35 = vcombine.high %v738_v31, %v666_v34  ;;  %v174_v44 = vcombine.high %v156_v30, %v666_v34  ;;  %v165_v22 = vrot.slane %v157_v12, %v732_v23  ;;  %v172_v24 = vrot.slane %v158_v18, %v732_v23  ;;  %s696_s0 = smov 62  }
  0x99   :  { %v108_v36 = vsel %vm102_vm0, %v55_v28, %v93_v32  ;;  %v104_v37 = vsel %vm102_vm0, %v36_v29, %v74_v33 }
  0x9a   :  { %v199_v38 = vrot.slane %v108_v36, %v728_v17  ;;  %v184_v39 = vrot.slane %v104_v37, %v728_v17  ;;  %376 = vrot.lane.b32.xlu0 %v173_v35, %s667_s1  ;;  %v192_v13 = vcombine.high %v108_v36, %v666_v34  ;;  %v177_v14 = vcombine.high %v104_v37, %v666_v34  ;;  %s697_s1 = smov [#allocation5]  }
  0x9b   :  { %v175_v27 = vcombine.high %v165_v22, %v666_v34  ;;  %v176_v33 = vcombine.high %v172_v24, %v666_v34 }
  0x9c   :  { %v207_v40 = vcombine.low %v184_v39, %v199_v38  ;;  %v208_v41 = vcombine.high %v184_v39, %v199_v38  ;;  %v59_v42 = vpop.permute.xlu1 %58  ;;  %v40_v43 = vpop.permute.xlu0 %39  ;;  %v206_v19 = vrot.slane %v192_v13, %v728_v17  ;;  %v191_v20 = vrot.slane %v177_v14, %v728_v17 }
  0x9e   :  { %384 = vrot.lane.b32.xlu0 %v174_v44, %s668_s23  ;;  %v215_v45 = vrot.slane %v207_v40, %v732_v23  ;;  %v222_v49 = vrot.slane %v208_v41, %v732_v23  ;;  %v223_v28 = vcombine.low %v191_v20, %v206_v19  ;;  %v224_v29 = vcombine.high %v191_v20, %v206_v19  ;;  %s569_s23 = sshll.u32 %s697_s1, 4  ;;  %s570_s23 = int_to_ptr.vmem [resolvable:$true] %s569_s23 }
  0x9f   :  { %p641_p9 = scmp.lt.s32.totalorder %s570_s23, %s570_s23 }
  0xa0   :  { %v97_v46 = vpop.permute.xlu1 %96  ;;  %404 = vrot.lane.b32.xlu1 %v215_v45, %s669_s24  ;;  %v78_v47 = vpop.permute.xlu0 %77  ;;  %v239_v48 = vcombine.high %v215_v45, %v666_v34  ;;  %v240_v58 = vcombine.high %v222_v49, %v666_v34  ;;  %v231_v35 = vrot.slane %v223_v28, %v732_v23  ;;  %v238_v36 = vrot.slane %v224_v29, %v732_v23  ;;  %s636_s24 = scalar_lea.vmem %s570_s23, 32 }
  0xa1   :  { %v109_v50 = vsel %vm102_vm0, %v59_v42, %v97_v46  ;;  %v105_v51 = vsel %vm102_vm0, %v40_v43, %v78_v47  ;;  %p637_p8 = scmp.ne.s32.totalorder %s570_s23, %s636_s24  ;;  %p642_p10 = scmp.lt.s32.totalorder %s636_s24, %s636_s24 }
  0xa2   :  { %v265_v52 = vrot.slane %v109_v50, %v728_v17  ;;  %v250_v53 = vrot.slane %v105_v51, %v728_v17  ;;  %408 = vrot.lane.b32.xlu0 %v239_v48, %s670_s25  ;;  %v258_v25 = vcombine.high %v109_v50, %v666_v34  ;;  %v243_v26 = vcombine.high %v105_v51, %v666_v34 }
  0xa3   :  { %v241_v39 = vcombine.high %v231_v35, %v666_v34  ;;  %v242_v41 = vcombine.high %v238_v36, %v666_v34  ;;  %p643_p11 = por %p642_p10, %p641_p9 }
  0xa4   :  { %v273_v54 = vcombine.low %v250_v53, %v265_v52  ;;  %v274_v55 = vcombine.high %v250_v53, %v265_v52  ;;  %v63_v56 = vpop.permute.xlu1 %62  ;;  %412 = vrot.lane.b32.xlu1 %v222_v49, %s671_s26  ;;  %v44_v57 = vpop.permute.xlu0 %43  ;;  %v272_v30 = vrot.slane %v258_v25, %v728_v17  ;;  %v257_v32 = vrot.slane %v243_v26, %v728_v17 }
  0xa5   :  { %p644_p12 = pnand %p643_p11, %p637_p8 }
  0xa6   :  { %416 = vrot.lane.b32.xlu0 %v240_v58, %s672_s27  ;;  %v281_v59 = vrot.slane %v273_v54, %v732_v23  ;;  %v288_v0 = vrot.slane %v274_v55, %v732_v23  ;;  %v289_v40 = vcombine.low %v257_v32, %v272_v30  ;;  %v290_v45 = vcombine.high %v257_v32, %v272_v30 }
  0xa8   :  { %v101_v61 = vpop.permute.xlu1 %100  ;;  %436 = vrot.lane.b32.xlu1 %v281_v59, %s673_s28  ;;  %v82_v62 = vpop.permute.xlu0 %81  ;;  %v305_v63 = vcombine.high %v281_v59, %v666_v34  ;;  %v306_v9 = vcombine.high %v288_v0, %v666_v34  ;;  %v297_v44 = vrot.slane %v289_v40, %v732_v23  ;;  %v304_v47 = vrot.slane %v290_v45, %v732_v23 }
  0xa9   :  { %v110_v2 = vsel %vm102_vm0, %v63_v56, %v101_v61  ;;  %v106_v3 = vsel %vm102_vm0, %v44_v57, %v82_v62  ;;  %vm529_vm0 = vcmask 261120  }
  0xaa   :  { %v331_v4 = vrot.slane %v110_v2, %v728_v17  ;;  %v316_v5 = vrot.slane %v106_v3, %v728_v17  ;;  %440 = vrot.lane.b32.xlu0 %v305_v63, %s674_s29  ;;  %v324_v37 = vcombine.high %v110_v2, %v666_v34  ;;  %v309_v38 = vcombine.high %v106_v3, %v666_v34 }
  0xab   :  { %v307_v46 = vcombine.high %v297_v44, %v666_v34 }
  0xac   :  { %v339_v7 = vcombine.low %v316_v5, %v331_v4  ;;  %v340_v8 = vcombine.high %v316_v5, %v331_v4  ;;  %444 = vrot.lane.b32.xlu1 %v288_v0, %s675_s30  ;;  %v338_v42 = vrot.slane %v324_v37, %v728_v17  ;;  %v323_v43 = vrot.slane %v309_v38, %v728_v17 }
  0xad   :  { %v308_v17 = vcombine.high %v304_v47, %v666_v34 }
  0xae   :  { %448 = vrot.lane.b32.xlu0 %v306_v9, %s676_s3  ;;  %v347_v11 = vrot.slane %v339_v7, %v732_v23  ;;  %v354_v16 = vrot.slane %v340_v8, %v732_v23  ;;  %v355_v48 = vcombine.low %v323_v43, %v338_v42  ;;  %v356_v50 = vcombine.high %v323_v43, %v338_v42 }
  0xb0   :  { %468 = vrot.lane.b32.xlu1 %v347_v11, %s677_s4  ;;  %v371_v15 = vcombine.high %v347_v11, %v666_v34  ;;  %v372_v21 = vcombine.high %v354_v16, %v666_v34  ;;  %v363_v49 = vrot.slane %v355_v48, %v732_v23  ;;  %v370_v52 = vrot.slane %v356_v50, %v732_v23 }
  0xb2   :  { %472 = vrot.lane.b32.xlu0 %v371_v15, %s678_s5  ;;  %v373_v51 = vcombine.high %v363_v49, %v666_v34  ;;  %v374_v53 = vcombine.high %v370_v52, %v666_v34 }
  0xb4   :  { %476 = vrot.lane.b32.xlu1 %v354_v16, %s679_s6 }
  0xb6   :  { %480 = vrot.lane.b32.xlu0 %v372_v21, %s680_s7 }
  0xb8   :  { %388 = vrot.lane.b32.xlu1 %v165_v22, %s681_s8 }
  0xba   :  { %392 = vrot.lane.b32.xlu0 %v175_v27, %s682_s9 }
  0xbc   :  { %396 = vrot.lane.b32.xlu1 %v172_v24, %s683_s10 }
  0xbe   :  { %400 = vrot.lane.b32.xlu0 %v176_v33, %s684_s11 }
  0xc0   :  { %420 = vrot.lane.b32.xlu1 %v231_v35, %s685_s12 }
  0xc2   :  { %424 = vrot.lane.b32.xlu0 %v241_v39, %s686_s13 }
  0xc4   :  { %428 = vrot.lane.b32.xlu1 %v238_v36, %s687_s14 }
  0xc6   :  { %432 = vrot.lane.b32.xlu0 %v242_v41, %s688_s15 }
  0xc8   :  { %452 = vrot.lane.b32.xlu1 %v297_v44, %s689_s16 }
  0xca   :  { %456 = vrot.lane.b32.xlu0 %v307_v46, %s690_s17 }
  0xcc   :  { %460 = vrot.lane.b32.xlu1 %v304_v47, %s691_s18 }
  0xce   :  { %464 = vrot.lane.b32.xlu0 %v308_v17, %s692_s19 }
  0xd0   :  { %484 = vrot.lane.b32.xlu1 %v363_v49, %s693_s20 }
  0xd2   :  { %488 = vrot.lane.b32.xlu0 %v373_v51, %s694_s21 }
  0xd4   :  { %492 = vrot.lane.b32.xlu1 %v370_v52, %s695_s22 }
  0xd6   :  { %496 = vrot.lane.b32.xlu0 %v374_v53, %s696_s0 }
 0x10a   :  { %v381_v55 = vpop.permute.xlu1 %380 }
 0x10c   :  { %v377_v54 = vpop.permute.xlu0 %376 }
 0x10d   :  { %v500_v34 = vsel %vm499_vm1, %v738_v31, %v377_v54  ;;  %vm531_vm1 = vcmask 277504  }
 0x10e   :  { %v502_v4 = vsel %vm501_vm2, %v500_v34, %v381_v55  ;;  %vm533_vm2 = vcmask 293888  }
 0x110   :  { %v385_v56 = vpop.permute.xlu0 %384 }
 0x111   :  { %v504_v5 = vsel %vm503_vm3, %v502_v4, %v385_v56  ;;  %vm535_vm3 = vcmask 310272  }
 0x112   :  { %v405_v57 = vpop.permute.xlu1 %404 }
 0x114   :  { %v409_v58 = vpop.permute.xlu0 %408 }
 0x116   :  { %v413_v59 = vpop.permute.xlu1 %412 }
 0x118   :  { %v417_v60 = vpop.permute.xlu0 %416 }
 0x11a   :  { %v437_v61 = vpop.permute.xlu1 %436 }
 0x11c   :  { %v441_v62 = vpop.permute.xlu0 %440 }
 0x11e   :  { %v445_v63 = vpop.permute.xlu1 %444 }
 0x120   :  { %v449_v0 = vpop.permute.xlu0 %448 }
 0x122   :  { %v799_v23 = vpop.permute.xlu1 %468 }
 0x124   :  { %v801_v1 = vpop.permute.xlu0 %472 }
 0x126   :  { %v804_v2 = vpop.permute.xlu1 %476 }
 0x128   :  { %v806_v3 = vpop.permute.xlu0 %480 }
 0x12a   :  { %v389_v6 = vpop.permute.xlu1 %388 }
 0x12b   :  { %v506_v7 = vsel %vm505_vm4, %v504_v5, %v389_v6  ;;  %vm537_vm4 = vcmask 326656  }
 0x12c   :  { %v393_v8 = vpop.permute.xlu0 %392 }
 0x12d   :  { %v508_v9 = vsel %vm507_vm5, %v506_v7, %v393_v8  ;;  %vm539_vm5 = vcmask 343040  }
 0x12e   :  { %v397_v10 = vpop.permute.xlu1 %396 }
 0x12f   :  { %v510_v11 = vsel %vm509_vm6, %v508_v9, %v397_v10  ;;  %vm541_vm6 = vcmask 359424  }
 0x130   :  { %v401_v31 = vpop.permute.xlu0 %400 }
 0x131   :  { %v512_v12 = vsel %vm511_vm7, %v510_v11, %v401_v31  ;;  %vm543_vm7 = vcmask 375808  }
 0x132   :  { %v514_v13 = vsel %vm513_vm8, %v512_v12, %v405_v57  ;;  %v421_v14 = vpop.permute.xlu1 %420  ;;  %vm545_vm8 = vcmask 392192  }
 0x133   :  { %v516_v15 = vsel %vm515_vm9, %v514_v13, %v409_v58  ;;  %vm547_vm9 = vcmask 408576  }
 0x134   :  { %v518_v16 = vsel %vm517_vm10, %v516_v15, %v413_v59  ;;  %v425_v18 = vpop.permute.xlu0 %424  ;;  %vm549_vm10 = vcmask 424960  }
 0x135   :  { %v520_v19 = vsel %vm519_vm11, %v518_v16, %v417_v60  ;;  %vm551_vm11 = vcmask 441344  }
 0x136   :  { %v522_v20 = vsel %vm521_vm12, %v520_v19, %v421_v14  ;;  %v429_v21 = vpop.permute.xlu1 %428  ;;  %vm553_vm12 = vcmask 457728  }
 0x137   :  { %v524_v22 = vsel %vm523_vm13, %v522_v20, %v425_v18  ;;  %vm555_vm13 = vcmask 474112  }
 0x138   :  { %v526_v24 = vsel %vm525_vm14, %v524_v22, %v429_v21  ;;  %v433_v25 = vpop.permute.xlu0 %432  ;;  %vm557_vm14 = vcmask 490496  }
 0x139   :  { %v528_v26 = vsel %vm527_vm15, %v526_v24, %v433_v25  ;;  %vm559_vm15 = vcmask 506880  }
 0x13a   :  { %v530_v27 = vsel %vm529_vm0, %v528_v26, %v437_v61  ;;  %v453_v28 = vpop.permute.xlu1 %452  ;;  %vm561_vm0 = vcmask 517120  }
 0x13b   :  { %v532_v29 = vsel %vm531_vm1, %v530_v27, %v441_v62 }
 0x13c   :  { %v534_v30 = vsel %vm533_vm2, %v532_v29, %v445_v63  ;;  %v457_v32 = vpop.permute.xlu0 %456 }
 0x13d   :  { %v536_v33 = vsel %vm535_vm3, %v534_v30, %v449_v0 }
 0x13e   :  { %v538_v35 = vsel %vm537_vm4, %v536_v33, %v453_v28  ;;  %v461_v36 = vpop.permute.xlu1 %460 }
 0x13f   :  { %v540_v37 = vsel %vm539_vm5, %v538_v35, %v457_v32 }
 0x140   :  { %v542_v38 = vsel %vm541_vm6, %v540_v37, %v461_v36  ;;  %v465_v39 = vpop.permute.xlu0 %464 }
 0x141   :  { %v544_v40 = vsel %vm543_vm7, %v542_v38, %v465_v39 }
 0x142   :  { %v546_v41 = vsel %vm545_vm8, %v544_v40, %v799_v23  ;;  %v485_v42 = vpop.permute.xlu1 %484 }
 0x143   :  { %v548_v43 = vsel %vm547_vm9, %v546_v41, %v801_v1 }
 0x144   :  { %v550_v44 = vsel %vm549_vm10, %v548_v43, %v804_v2  ;;  %v489_v45 = vpop.permute.xlu0 %488 }
 0x145   :  { %v552_v46 = vsel %vm551_vm11, %v550_v44, %v806_v3 }
 0x146   :  { %v554_v47 = vsel %vm553_vm12, %v552_v46, %v485_v42  ;;  %v493_v48 = vpop.permute.xlu1 %492 }
 0x147   :  { %v556_v17 = vsel %vm555_vm13, %v554_v47, %v489_v45 }
 0x148   :  { %v558_v49 = vsel %vm557_vm14, %v556_v17, %v493_v48  ;;  %v497_v50 = vpop.permute.xlu0 %496 }
 0x149   :  { %v560_v51 = vsel %vm559_vm15, %v558_v49, %v497_v50 }
 0x14a   :  { %562 = vst.msk [vmem:[#allocation5] sm:$0x3] %vm561_vm0, %v560_v51 }
 0x14b   :  { %647 = shalt.err (!%p644_p12)
}
 0x14c   :  { %s648_s27 = scalar_lea.hbm %s826_s2, 32 }
 0x14d   :  { %p649_p13 = scmp.ne.s32.totalorder %s826_s2, %s648_s27  ;;  %p652_p0 = scmp.lt.u32.totalorder %s648_s27, %s826_s2 }
 0x14f   :  { %p654_p1 = pnand %p652_p0, %p649_p13 }
 0x151   :  { %657 = shalt.err (!%p654_p1)
}
 0x152   :  { %572 = dma.vmem_to_hbm [thread:$0]  %s570_s23, 32, %s826_s2, [#allocation4]  }
 0x153   :  { %660 = dma.done.wait [#allocation4], 32  }
 0x154   :  { %661 = vsyncadd [#allocation4], 4294967264 }
 0x155   :  { %576 = vsyncpa [#allocation3], 1 }
 0x156   :  { %577 = vsyncpa [#allocation4], 1 }

</bundles_post_ra>
